<compile_context>
chip_gen: v7x
topology: tpu7x:2x2x1
jax: 0.10.0
libtpu: 0.0.40
codegen_flags: <defaults>
</compile_context>

<pallas_src>
import jax
import jax.numpy as jnp
from jax.experimental import pallas as pl
from jax.experimental.pallas import tpu as pltpu

LANE = 128      # lane (last-dim) / MXU alignment
SUBLANE = 8     # sublane alignment for the batch (second-to-last) axis


def _round_up(n: int, m: int) -> int:
    return ((n + m - 1) // m) * m


def _pad2(a, rows: int, cols: int):
    pr, pc = rows - a.shape[0], cols - a.shape[1]
    if pr or pc:
        a = jnp.pad(a, ((0, pr), (0, pc)))
    return a


def mlp_kernel(x_ref, w1_ref, b1_ref, w2_ref, b2_ref, w3_ref, b3_ref, o_ref):
    """Fused (Linear + ReLU) x 3: bf16 MXU matmuls with f32 accumulation.

    NOTE: there is intentionally no reduction over the batch axis, so the
    ragged last batch tile (undefined out-of-bounds rows) is safe -- garbage
    rows never influence valid rows and their outputs are dropped by Pallas.
    """
    x = x_ref[...].astype(jnp.bfloat16)      # in-kernel cast (VPU, hidden under MXU)
    h1 = jnp.dot(x, w1_ref[...], preferred_element_type=jnp.float32) + b1_ref[...]
    h1 = jnp.maximum(h1, 0.0).astype(jnp.bfloat16)
    h2 = jnp.dot(h1, w2_ref[...], preferred_element_type=jnp.float32) + b2_ref[...]
    h2 = jnp.maximum(h2, 0.0).astype(jnp.bfloat16)
    h3 = jnp.dot(h2, w3_ref[...], preferred_element_type=jnp.float32) + b3_ref[...]
    o_ref[...] = jnp.maximum(h3, 0.0).astype(o_ref.dtype)


def prepare_params(w1, b1, w2, b2, w3, b3):
    """One-time parameter prep (outside the per-call path).

    Pads every feature dim to a multiple of 128 (lane-dense, unmasked stores)
    and casts weights to bf16; biases stay f32 for the epilogue.
    Returns (padded_params, out_dim).
    """
    in_dim, h1 = w1.shape
    h2 = w2.shape[1]
    out_dim = w3.shape[1]
    in_p, h1_p, h2_p, out_p = (_round_up(d, LANE) for d in (in_dim, h1, h2, out_dim))
    params = (
        _pad2(w1, in_p, h1_p).astype(jnp.bfloat16),
        _pad2(b1.reshape(1, -1).astype(jnp.float32), 1, h1_p),
        _pad2(w2, h1_p, h2_p).astype(jnp.bfloat16),
        _pad2(b2.reshape(1, -1).astype(jnp.float32), 1, h2_p),
        _pad2(w3, h2_p, out_p).astype(jnp.bfloat16),
        _pad2(b3.reshape(1, -1).astype(jnp.float32), 1, out_p),
    )
    return params, out_dim


def _build_call(*, bb, n_tiles, B_p, in_p, h1_p, h2_p, out_p, out_dtype,
                vmem_limit, flops, bytes_accessed, single_buffer_params):
    def param_spec(shape):
        idx = lambda i: (0, 0)
        if single_buffer_params:
            # Grid-invariant parameters: one VMEM buffer is enough.
            return pl.BlockSpec(shape, idx, pipeline_mode=pl.Buffered(1))
        return pl.BlockSpec(shape, idx)

    return pl.pallas_call(
        mlp_kernel,
        out_shape=jax.ShapeDtypeStruct((B_p, out_p), out_dtype),
        grid_spec=pltpu.PrefetchScalarGridSpec(
            num_scalar_prefetch=0,
            grid=(n_tiles,),
            in_specs=[
                # x: tiled over the batch axis (double-buffered by the pipeliner).
                pl.BlockSpec((bb, in_p), lambda i: (i, 0)),
                # Parameters: constant index_map -> resident across grid steps.
                param_spec((in_p, h1_p)),
                param_spec((1, h1_p)),
                param_spec((h1_p, h2_p)),
                param_spec((1, h2_p)),
                param_spec((h2_p, out_p)),
                param_spec((1, out_p)),
            ],
            out_specs=pl.BlockSpec((bb, out_p), lambda i: (i, 0)),
        ),
        compiler_params=pltpu.CompilerParams(
            dimension_semantics=("parallel",),   # megacore sharding over batch tiles
            vmem_limit_bytes=vmem_limit,
        ),
        cost_estimate=pl.CostEstimate(
            flops=flops, transcendentals=0, bytes_accessed=bytes_accessed),
    )


def neural_network_forward(x, params, out_dim, *, block_b=256, out_dtype=None):
    """Forward pass.  `params` must come from `prepare_params`."""
    w1b, b1p, w2b, b2p, w3b, b3p = params
    B, in_dim = x.shape
    in_p, h1_p = w1b.shape
    h2_p = w2b.shape[1]
    out_p = w3b.shape[1]
    if out_dtype is None:
        out_dtype = x.dtype                       # bf16 callers get bf16 writeback

    # ---- batch tiling: cdiv grid, no padding to a multiple of the tile ------
    B_p = _round_up(B, SUBLANE)
    bb = max(SUBLANE, min(_round_up(block_b, SUBLANE), B_p))
    if bb > 256:
        bb = (bb // 256) * 256                    # MXU-aligned M tiles (mult of 128 for v5e)
    if B_p >= 512:                                # guarantee >=2 tiles for v7x megacore
        bb = min(bb, max(256, _round_up(pl.cdiv(B_p, 2), 256)))
    n_tiles = pl.cdiv(B_p, bb)

    # ---- input: feed f32 x directly (bf16 cast happens in-kernel) -----------
    xp = x
    if B_p != B or in_p != in_dim:
        xp = _pad2(x, B_p, in_p)                  # zero pad is exact (padded W rows are 0)

    # ---- roofline hints & explicit scoped-VMEM budget ------------------------
    flops = 2 * B_p * (in_p * h1_p + h1_p * h2_p + h2_p * out_p)
    param_bytes = ((w1b.size + w2b.size + w3b.size) * 2
                   + (b1p.size + b2p.size + b3p.size) * 4)
    out_itemsize = jnp.dtype(out_dtype).itemsize
    bytes_accessed = (xp.size * xp.dtype.itemsize + param_bytes
                      + B_p * out_p * out_itemsize)
    vmem_need = (
        2 * param_bytes                                # upper bound (double-buffered params)
        + 2 * bb * in_p * xp.dtype.itemsize            # double-buffered x tiles
        + 2 * bb * out_p * out_itemsize                # double-buffered out tiles
        + bb * (h1_p + h2_p) * 6 + bb * out_p * 4      # f32 + bf16 intermediates
    )
    vmem_limit = int(min(max(vmem_need * 5 // 4 + (2 << 20), 16 << 20), 64 << 20))

    common = dict(bb=bb, n_tiles=n_tiles, B_p=B_p, in_p=in_p, h1_p=h1_p,
                  h2_p=h2_p, out_p=out_p, out_dtype=out_dtype,
                  vmem_limit=vmem_limit, flops=flops,
                  bytes_accessed=bytes_accessed)
    args = (xp, w1b, b1p, w2b, b2p, w3b, b3p)

    try:
        out_padded = _build_call(single_buffer_params=True, **common)(*args)
    except Exception:
        # pl.Buffered(1) not supported by this JAX/Mosaic version: fall back to
        # default double buffering (params are still DMA'd only once because the
        # index_map is constant; this only costs VMEM capacity).
        out_padded = _build_call(single_buffer_params=False, **common)(*args)

    return out_padded[:B, :out_dim]


if __name__ == "__main__":
    # Small shapes consistent with the module: batch=8, in=256, h1=128, h2=64, out=32.
    B, in_dim, n_hidden_1, n_hidden_2, out_dim = 8, 256, 128, 64, 32

    key = jax.random.PRNGKey(0)
    kx, k1w, k1b, k2w, k2b, k3w, k3b = jax.random.split(key, 7)

    def init_linear(kw, kb, fan_in, fan_out):
        # PyTorch nn.Linear default init: U(-1/sqrt(fan_in), 1/sqrt(fan_in)).
        bound = 1.0 / jnp.sqrt(fan_in)
        w = jax.random.uniform(kw, (fan_in, fan_out), jnp.float32, -bound, bound)
        b = jax.random.uniform(kb, (fan_out,), jnp.float32, -bound, bound)
        return w, b

    x = jax.random.normal(kx, (B, in_dim), jnp.float32)
    w1, b1 = init_linear(k1w, k1b, in_dim, n_hidden_1)
    w2, b2 = init_linear(k2w, k2b, n_hidden_1, n_hidden_2)
    w3, b3 = init_linear(k3w, k3b, n_hidden_2, out_dim)

    params, od = prepare_params(w1, b1, w2, b2, w3, b3)
    out = neural_network_forward(x, params, od)
    out = jax.block_until_ready(out)

    # Reference applying the same bf16 operand rounding as the kernel's MXU path
    # (bf16 operands, f32 accumulation, f32 epilogue).  A bit-exact f32 torch
    # parity would require an f32 matmul path instead of bf16 casts.
    def r(a):
        return a.astype(jnp.bfloat16).astype(jnp.float32)

    h = jnp.maximum(r(x) @ r(w1) + b1, 0.0)
    h = jnp.maximum(r(h) @ r(w2) + b2, 0.0)
    ref = jnp.maximum(r(h) @ r(w3) + b3, 0.0)

    assert out.shape == (B, out_dim)
    assert jnp.allclose(out, ref, atol=1e-2, rtol=1e-2), "mismatch vs reference"
    print("KERNEL_OK")
</pallas_src>

<mosaic_0001>
module attributes {stable_mosaic.version = 11 : i64} {
  func.func @mlp_kernel(%arg0: i32, %arg1: memref<8x256xf32, #tpu.memory_space<vmem>>, %arg2: memref<256x128xbf16, #tpu.memory_space<vmem>>, %arg3: memref<1x128xf32, #tpu.memory_space<vmem>>, %arg4: memref<128x128xbf16, #tpu.memory_space<vmem>>, %arg5: memref<1x128xf32, #tpu.memory_space<vmem>>, %arg6: memref<128x128xbf16, #tpu.memory_space<vmem>>, %arg7: memref<1x128xf32, #tpu.memory_space<vmem>>, %arg8: memref<8x128xf32, #tpu.memory_space<vmem>>) attributes {dimension_semantics = [#tpu.dimension_semantics<parallel>], iteration_bounds = array<i64: 1>, scalar_prefetch = 0 : i64, scratch_operands = 0 : i64, tpu.core_type = #tpu.core_type<tc>, window_params = [{transform_indices = @transform_0, window_bounds = array<i64: 8, 256>}, {pipeline_mode = #tpu.pipeline_mode<synchronous>, transform_indices = @transform_1, window_bounds = array<i64: 256, 128>}, {pipeline_mode = #tpu.pipeline_mode<synchronous>, transform_indices = @transform_2, window_bounds = array<i64: 1, 128>}, {pipeline_mode = #tpu.pipeline_mode<synchronous>, transform_indices = @transform_3, window_bounds = array<i64: 128, 128>}, {pipeline_mode = #tpu.pipeline_mode<synchronous>, transform_indices = @transform_4, window_bounds = array<i64: 1, 128>}, {pipeline_mode = #tpu.pipeline_mode<synchronous>, transform_indices = @transform_5, window_bounds = array<i64: 128, 128>}, {pipeline_mode = #tpu.pipeline_mode<synchronous>, transform_indices = @transform_6, window_bounds = array<i64: 1, 128>}, {transform_indices = @transform_7, window_bounds = array<i64: 8, 128>}]} {
    %c0 = arith.constant 0 : index
    %c0_0 = arith.constant 0 : index
    %0 = vector.load %arg1[%c0, %c0_0] : memref<8x256xf32, #tpu.memory_space<vmem>>, vector<8x256xf32>
    %1 = arith.truncf %0 : vector<8x256xf32> to vector<8x256xbf16>
    %c0_1 = arith.constant 0 : index
    %c0_2 = arith.constant 0 : index
    %2 = vector.load %arg2[%c0_1, %c0_2] : memref<256x128xbf16, #tpu.memory_space<vmem>>, vector<256x128xbf16>
    %cst = arith.constant dense<0.000000e+00> : vector<8x128xf32>
    %3 = tpu.matmul %1, %2, %cst {dimension_numbers = #tpu.dot_dimension_numbers<[1], [0], [0], [1], [0, 0, 1, 1], [], []>} : vector<8x256xbf16>, vector<256x128xbf16>, vector<8x128xf32> -> vector<8x128xf32>
    %c0_3 = arith.constant 0 : index
    %c0_4 = arith.constant 0 : index
    %4 = vector.load %arg3[%c0_3, %c0_4] : memref<1x128xf32, #tpu.memory_space<vmem>>, vector<1x128xf32>
    %5 = vector.broadcast %4 : vector<1x128xf32> to vector<8x128xf32>
    %6 = arith.addf %3, %5 : vector<8x128xf32>
    %cst_5 = arith.constant 0.000000e+00 : f32
    %7 = vector.broadcast %cst_5 : f32 to vector<8x128xf32>
    %8 = arith.maximumf %6, %7 : vector<8x128xf32>
    %9 = arith.truncf %8 : vector<8x128xf32> to vector<8x128xbf16>
    %c0_6 = arith.constant 0 : index
    %c0_7 = arith.constant 0 : index
    %10 = vector.load %arg4[%c0_6, %c0_7] : memref<128x128xbf16, #tpu.memory_space<vmem>>, vector<128x128xbf16>
    %cst_8 = arith.constant dense<0.000000e+00> : vector<8x128xf32>
    %11 = tpu.matmul %9, %10, %cst_8 {dimension_numbers = #tpu.dot_dimension_numbers<[1], [0], [0], [1], [0, 0, 1, 1], [], []>} : vector<8x128xbf16>, vector<128x128xbf16>, vector<8x128xf32> -> vector<8x128xf32>
    %c0_9 = arith.constant 0 : index
    %c0_10 = arith.constant 0 : index
    %12 = vector.load %arg5[%c0_9, %c0_10] : memref<1x128xf32, #tpu.memory_space<vmem>>, vector<1x128xf32>
    %13 = vector.broadcast %12 : vector<1x128xf32> to vector<8x128xf32>
    %14 = arith.addf %11, %13 : vector<8x128xf32>
    %cst_11 = arith.constant 0.000000e+00 : f32
    %15 = vector.broadcast %cst_11 : f32 to vector<8x128xf32>
    %16 = arith.maximumf %14, %15 : vector<8x128xf32>
    %17 = arith.truncf %16 : vector<8x128xf32> to vector<8x128xbf16>
    %c0_12 = arith.constant 0 : index
    %c0_13 = arith.constant 0 : index
    %18 = vector.load %arg6[%c0_12, %c0_13] : memref<128x128xbf16, #tpu.memory_space<vmem>>, vector<128x128xbf16>
    %cst_14 = arith.constant dense<0.000000e+00> : vector<8x128xf32>
    %19 = tpu.matmul %17, %18, %cst_14 {dimension_numbers = #tpu.dot_dimension_numbers<[1], [0], [0], [1], [0, 0, 1, 1], [], []>} : vector<8x128xbf16>, vector<128x128xbf16>, vector<8x128xf32> -> vector<8x128xf32>
    %c0_15 = arith.constant 0 : index
    %c0_16 = arith.constant 0 : index
    %20 = vector.load %arg7[%c0_15, %c0_16] : memref<1x128xf32, #tpu.memory_space<vmem>>, vector<1x128xf32>
    %21 = vector.broadcast %20 : vector<1x128xf32> to vector<8x128xf32>
    %22 = arith.addf %19, %21 : vector<8x128xf32>
    %cst_17 = arith.constant 0.000000e+00 : f32
    %23 = vector.broadcast %cst_17 : f32 to vector<8x128xf32>
    %24 = arith.maximumf %22, %23 : vector<8x128xf32>
    %c0_18 = arith.constant 0 : index
    %c0_19 = arith.constant 0 : index
    %25 = vector.load %arg8[%c0_18, %c0_19] : memref<8x128xf32, #tpu.memory_space<vmem>>, vector<8x128xf32>
    tpu.vector_store %arg8[%c0_18, %c0_19], %24 {strides = array<i32>} : memref<8x128xf32, #tpu.memory_space<vmem>>, vector<8x128xf32>,
    return
  }
  func.func @transform_0(%arg0: i32) -> (i32, i32) {
    %c0_i32 = arith.constant 0 : i32
    %c0_i32_0 = arith.constant 0 : i32
    return %arg0, %c0_i32 : i32, i32
  }
  func.func @transform_1(%arg0: i32) -> (i32, i32) {
    %c0_i32 = arith.constant 0 : i32
    %c0_i32_0 = arith.constant 0 : i32
    %c0_i32_1 = arith.constant 0 : i32
    return %c0_i32, %c0_i32_0 : i32, i32
  }
  func.func @transform_2(%arg0: i32) -> (i32, i32) {
    %c0_i32 = arith.constant 0 : i32
    %c0_i32_0 = arith.constant 0 : i32
    %c0_i32_1 = arith.constant 0 : i32
    return %c0_i32, %c0_i32_0 : i32, i32
  }
  func.func @transform_3(%arg0: i32) -> (i32, i32) {
    %c0_i32 = arith.constant 0 : i32
    %c0_i32_0 = arith.constant 0 : i32
    %c0_i32_1 = arith.constant 0 : i32
    return %c0_i32, %c0_i32_0 : i32, i32
  }
  func.func @transform_4(%arg0: i32) -> (i32, i32) {
    %c0_i32 = arith.constant 0 : i32
    %c0_i32_0 = arith.constant 0 : i32
    %c0_i32_1 = arith.constant 0 : i32
    return %c0_i32, %c0_i32_0 : i32, i32
  }
  func.func @transform_5(%arg0: i32) -> (i32, i32) {
    %c0_i32 = arith.constant 0 : i32
    %c0_i32_0 = arith.constant 0 : i32
    %c0_i32_1 = arith.constant 0 : i32
    return %c0_i32, %c0_i32_0 : i32, i32
  }
  func.func @transform_6(%arg0: i32) -> (i32, i32) {
    %c0_i32 = arith.constant 0 : i32
    %c0_i32_0 = arith.constant 0 : i32
    %c0_i32_1 = arith.constant 0 : i32
    return %c0_i32, %c0_i32_0 : i32, i32
  }
  func.func @transform_7(%arg0: i32) -> (i32, i32) {
    %c0_i32 = arith.constant 0 : i32
    %c0_i32_0 = arith.constant 0 : i32
    return %arg0, %c0_i32 : i32, i32
  }
}

module attributes {stable_mosaic.version = 11 : i64} {
  func.func @mlp_kernel(%arg0: i32, %arg1: memref<8x256xf32, #tpu.memory_space<vmem>>, %arg2: memref<256x128xbf16, #tpu.memory_space<vmem>>, %arg3: memref<1x128xf32, #tpu.memory_space<vmem>>, %arg4: memref<128x128xbf16, #tpu.memory_space<vmem>>, %arg5: memref<1x128xf32, #tpu.memory_space<vmem>>, %arg6: memref<128x128xbf16, #tpu.memory_space<vmem>>, %arg7: memref<1x128xf32, #tpu.memory_space<vmem>>, %arg8: memref<8x128xf32, #tpu.memory_space<vmem>>) attributes {dimension_semantics = [#tpu.dimension_semantics<parallel>], iteration_bounds = array<i64: 1>, scalar_prefetch = 0 : i64, scratch_operands = 0 : i64, tpu.core_type = #tpu.core_type<tc>, window_params = [{transform_indices = @transform_0, window_bounds = array<i64: 8, 256>}, {pipeline_mode = #tpu.pipeline_mode<synchronous>, transform_indices = @transform_1, window_bounds = array<i64: 256, 128>}, {pipeline_mode = #tpu.pipeline_mode<synchronous>, transform_indices = @transform_2, window_bounds = array<i64: 1, 128>}, {pipeline_mode = #tpu.pipeline_mode<synchronous>, transform_indices = @transform_3, window_bounds = array<i64: 128, 128>}, {pipeline_mode = #tpu.pipeline_mode<synchronous>, transform_indices = @transform_4, window_bounds = array<i64: 1, 128>}, {pipeline_mode = #tpu.pipeline_mode<synchronous>, transform_indices = @transform_5, window_bounds = array<i64: 128, 128>}, {pipeline_mode = #tpu.pipeline_mode<synchronous>, transform_indices = @transform_6, window_bounds = array<i64: 1, 128>}, {transform_indices = @transform_7, window_bounds = array<i64: 8, 128>}]} {
    %c0 = arith.constant 0 : index
    %c0_0 = arith.constant 0 : index
    %0 = vector.load %arg1[%c0, %c0_0] : memref<8x256xf32, #tpu.memory_space<vmem>>, vector<8x256xf32>
    %1 = arith.truncf %0 : vector<8x256xf32> to vector<8x256xbf16>
    %c0_1 = arith.constant 0 : index
    %c0_2 = arith.constant 0 : index
    %2 = vector.load %arg2[%c0_1, %c0_2] : memref<256x128xbf16, #tpu.memory_space<vmem>>, vector<256x128xbf16>
    %cst = arith.constant dense<0.000000e+00> : vector<8x128xf32>
    %3 = tpu.matmul %1, %2, %cst {dimension_numbers = #tpu.dot_dimension_numbers<[1], [0], [0], [1], [0, 0, 1, 1], [], []>} : vector<8x256xbf16>, vector<256x128xbf16>, vector<8x128xf32> -> vector<8x128xf32>
    %c0_3 = arith.constant 0 : index
    %c0_4 = arith.constant 0 : index
    %4 = vector.load %arg3[%c0_3, %c0_4] : memref<1x128xf32, #tpu.memory_space<vmem>>, vector<1x128xf32>
    %5 = vector.broadcast %4 : vector<1x128xf32> to vector<8x128xf32>
    %6 = arith.addf %3, %5 : vector<8x128xf32>
    %cst_5 = arith.constant 0.000000e+00 : f32
    %7 = vector.broadcast %cst_5 : f32 to vector<8x128xf32>
    %8 = arith.maximumf %6, %7 : vector<8x128xf32>
    %9 = arith.truncf %8 : vector<8x128xf32> to vector<8x128xbf16>
    %c0_6 = arith.constant 0 : index
    %c0_7 = arith.constant 0 : index
    %10 = vector.load %arg4[%c0_6, %c0_7] : memref<128x128xbf16, #tpu.memory_space<vmem>>, vector<128x128xbf16>
    %cst_8 = arith.constant dense<0.000000e+00> : vector<8x128xf32>
    %11 = tpu.matmul %9, %10, %cst_8 {dimension_numbers = #tpu.dot_dimension_numbers<[1], [0], [0], [1], [0, 0, 1, 1], [], []>} : vector<8x128xbf16>, vector<128x128xbf16>, vector<8x128xf32> -> vector<8x128xf32>
    %c0_9 = arith.constant 0 : index
    %c0_10 = arith.constant 0 : index
    %12 = vector.load %arg5[%c0_9, %c0_10] : memref<1x128xf32, #tpu.memory_space<vmem>>, vector<1x128xf32>
    %13 = vector.broadcast %12 : vector<1x128xf32> to vector<8x128xf32>
    %14 = arith.addf %11, %13 : vector<8x128xf32>
    %cst_11 = arith.constant 0.000000e+00 : f32
    %15 = vector.broadcast %cst_11 : f32 to vector<8x128xf32>
    %16 = arith.maximumf %14, %15 : vector<8x128xf32>
    %17 = arith.truncf %16 : vector<8x128xf32> to vector<8x128xbf16>
    %c0_12 = arith.constant 0 : index
    %c0_13 = arith.constant 0 : index
    %18 = vector.load %arg6[%c0_12, %c0_13] : memref<128x128xbf16, #tpu.memory_space<vmem>>, vector<128x128xbf16>
    %cst_14 = arith.constant dense<0.000000e+00> : vector<8x128xf32>
    %19 = tpu.matmul %17, %18, %cst_14 {dimension_numbers = #tpu.dot_dimension_numbers<[1], [0], [0], [1], [0, 0, 1, 1], [], []>} : vector<8x128xbf16>, vector<128x128xbf16>, vector<8x128xf32> -> vector<8x128xf32>
    %c0_15 = arith.constant 0 : index
    %c0_16 = arith.constant 0 : index
    %20 = vector.load %arg7[%c0_15, %c0_16] : memref<1x128xf32, #tpu.memory_space<vmem>>, vector<1x128xf32>
    %21 = vector.broadcast %20 : vector<1x128xf32> to vector<8x128xf32>
    %22 = arith.addf %19, %21 : vector<8x128xf32>
    %cst_17 = arith.constant 0.000000e+00 : f32
    %23 = vector.broadcast %cst_17 : f32 to vector<8x128xf32>
    %24 = arith.maximumf %22, %23 : vector<8x128xf32>
    %c0_18 = arith.constant 0 : index
    %c0_19 = arith.constant 0 : index
    %25 = vector.load %arg8[%c0_18, %c0_19] : memref<8x128xf32, #tpu.memory_space<vmem>>, vector<8x128xf32>
    tpu.vector_store %arg8[%c0_18, %c0_19], %24 {strides = array<i32>} : memref<8x128xf32, #tpu.memory_space<vmem>>, vector<8x128xf32>,
    return
  }
  func.func @transform_0(%arg0: i32) -> (i32, i32) {
    %c0_i32 = arith.constant 0 : i32
    %c0_i32_0 = arith.constant 0 : i32
    return %arg0, %c0_i32 : i32, i32
  }
  func.func @transform_1(%arg0: i32) -> (i32, i32) {
    %c0_i32 = arith.constant 0 : i32
    %c0_i32_0 = arith.constant 0 : i32
    %c0_i32_1 = arith.constant 0 : i32
    return %c0_i32, %c0_i32_0 : i32, i32
  }
  func.func @transform_2(%arg0: i32) -> (i32, i32) {
    %c0_i32 = arith.constant 0 : i32
    %c0_i32_0 = arith.constant 0 : i32
    %c0_i32_1 = arith.constant 0 : i32
    return %c0_i32, %c0_i32_0 : i32, i32
  }
  func.func @transform_3(%arg0: i32) -> (i32, i32) {
    %c0_i32 = arith.constant 0 : i32
    %c0_i32_0 = arith.constant 0 : i32
    %c0_i32_1 = arith.constant 0 : i32
    return %c0_i32, %c0_i32_0 : i32, i32
  }
  func.func @transform_4(%arg0: i32) -> (i32, i32) {
    %c0_i32 = arith.constant 0 : i32
    %c0_i32_0 = arith.constant 0 : i32
    %c0_i32_1 = arith.constant 0 : i32
    return %c0_i32, %c0_i32_0 : i32, i32
  }
  func.func @transform_5(%arg0: i32) -> (i32, i32) {
    %c0_i32 = arith.constant 0 : i32
    %c0_i32_0 = arith.constant 0 : i32
    %c0_i32_1 = arith.constant 0 : i32
    return %c0_i32, %c0_i32_0 : i32, i32
  }
  func.func @transform_6(%arg0: i32) -> (i32, i32) {
    %c0_i32 = arith.constant 0 : i32
    %c0_i32_0 = arith.constant 0 : i32
    %c0_i32_1 = arith.constant 0 : i32
    return %c0_i32, %c0_i32_0 : i32, i32
  }
  func.func @transform_7(%arg0: i32) -> (i32, i32) {
    %c0_i32 = arith.constant 0 : i32
    %c0_i32_0 = arith.constant 0 : i32
    return %arg0, %c0_i32 : i32, i32
  }
}

</mosaic_0001>

<bundles_post_ra>
// kernel: tpu_custom_call.1
= control target key start
LH: loop header
LB: loop body
LE: loop exit
PB: predicated region body
PF: predicated region fallthrough
CT: control target
= control target key end

     0   :  { %12 = vsyncpa [#allocation3], 0  ;;  %s924_s0 = inlined_call_operand.hbm [shape: f32[8,256], index: 0, kind: input, shape index: {}]   ;;  %s925_s1 = inlined_call_operand.hbm [shape: bf16[256,128], index: 1, kind: input, shape index: {}]   ;;  %s926_s2 = inlined_call_operand.vmem [shape: f32[1,128], index: 2, kind: input, shape index: {}]   ;;  %s927_s3 = inlined_call_operand.hbm [shape: bf16[128,128], index: 3, kind: input, shape index: {}]   ;;  %s928_s4 = inlined_call_operand.vmem [shape: f32[1,128], index: 4, kind: input, shape index: {}]   ;;  %s929_s5 = inlined_call_operand.hbm [shape: bf16[128,128], index: 5, kind: input, shape index: {}]   ;;  %s930_s6 = inlined_call_operand.vmem [shape: f32[1,128], index: 6, kind: input, shape index: {}]   ;;  %s931_s7 = inlined_call_operand.hbm [shape: f32[8,128], index: 7, kind: output, shape index: {}]  }
   0x1   :  { %13 = vsyncpa [#allocation6], 0 }
   0x2   :  { %14 = vsyncpa [#allocation9], 0 }
   0x3   :  { %15 = vsyncpa [#allocation4], 0  ;;  %s779_s24 = smov [#allocation5]   ;;  %s661_s28 = scalar_lea.hbm %s925_s1, 2048 }
   0x4   :  { %s31_s25 = sshll.u32 %s779_s24, 4  ;;  %p662_p0 = scmp.ne.s32.totalorder %s925_s1, %s661_s28  ;;  %s32_s25 = int_to_ptr.vmem [resolvable:$true] %s31_s25 }
   0x5   :  { %p665_p1 = scmp.lt.u32.totalorder %s661_s28, %s925_s1 }
   0x7   :  { %p667_p2 = pnand %p665_p1, %p662_p0 }
   0x9   :  { %670 = shalt.err (!%p667_p2)
}
   0xa   :  { %s671_s10 = scalar_lea.vmem %s32_s25, 2048  ;;  %p676_p4 = scmp.lt.s32.totalorder %s32_s25, %s32_s25 }
   0xb   :  { %p672_p3 = scmp.ne.s32.totalorder %s32_s25, %s671_s10  ;;  %p677_p5 = scmp.lt.s32.totalorder %s671_s10, %s671_s10 }
   0xd   :  { %p678_p6 = por %p677_p5, %p676_p4 }
   0xf   :  { %p679_p7 = pnand %p678_p6, %p672_p3 }
  0x11   :  { %682 = shalt.err (!%p679_p7)
}
  0x12   :  { %s780_s11 = smov 64   ;;  %s781_s12 = smov 4  }
  0x13   :  { %37 = dma.hbm_to_vmem [thread:$0]  %s925_s1, 2048, %s32_s25, [#allocation6], %s780_s11, %s780_s11, %s781_s12  }
  0x14   :  { %s782_s15 = smov [#allocation2]   ;;  %s783_s17 = smov [#allocation7]  }
  0x15   :  { %s22_s16 = sshll.u32 %s782_s15, 4  ;;  %s45_s18 = sshll.u32 %s783_s17, 4  ;;  %s23_s16 = int_to_ptr.vmem [resolvable:$true] %s22_s16  ;;  %s46_s18 = int_to_ptr.vmem [resolvable:$true] %s45_s18 }
  0x16   :  { %s683_s21 = scalar_lea.hbm %s924_s0, 256 }
  0x17   :  { %p684_p8 = scmp.ne.s32.totalorder %s924_s0, %s683_s21  ;;  %p687_p9 = scmp.lt.u32.totalorder %s683_s21, %s924_s0 }
  0x19   :  { %p689_p10 = pnand %p687_p9, %p684_p8 }
  0x1b   :  { %692 = shalt.err (!%p689_p10)
}
  0x1c   :  { %s693_s1 = scalar_lea.vmem %s23_s16, 256  ;;  %p698_p12 = scmp.lt.s32.totalorder %s23_s16, %s23_s16 }
  0x1d   :  { %p694_p11 = scmp.ne.s32.totalorder %s23_s16, %s693_s1  ;;  %p699_p13 = scmp.lt.s32.totalorder %s693_s1, %s693_s1 }
  0x1f   :  { %p700_p0 = por %p699_p13, %p698_p12 }
  0x21   :  { %p701_p1 = pnand %p700_p0, %p694_p11 }
  0x23   :  { %704 = shalt.err (!%p701_p1)
}
  0x24   :  { %25 = dma.hbm_to_vmem [thread:$0]  %s924_s0, 256, %s23_s16, [#allocation3]  }
  0x25   :  { %s705_s30 = scalar_lea.hbm %s927_s3, 1024 }
  0x26   :  { %p706_p2 = scmp.ne.s32.totalorder %s927_s3, %s705_s30  ;;  %p709_p3 = scmp.lt.u32.totalorder %s705_s30, %s927_s3 }
  0x28   :  { %p711_p4 = pnand %p709_p3, %p706_p2 }
  0x2a   :  { %714 = shalt.err (!%p711_p4)
}
  0x2b   :  { %s715_s14 = scalar_lea.vmem %s46_s18, 1024  ;;  %p720_p6 = scmp.lt.s32.totalorder %s46_s18, %s46_s18 }
  0x2c   :  { %p716_p5 = scmp.ne.s32.totalorder %s46_s18, %s715_s14  ;;  %p721_p7 = scmp.lt.s32.totalorder %s715_s14, %s715_s14 }
  0x2e   :  { %p722_p8 = por %p721_p7, %p720_p6 }
  0x30   :  { %p723_p9 = pnand %p722_p8, %p716_p5 }
  0x32   :  { %726 = shalt.err (!%p723_p9)
}
  0x33   :  { %51 = dma.hbm_to_vmem [thread:$0]  %s927_s3, 1024, %s46_s18, [#allocation6], %s780_s11, %s780_s11, %s781_s12  }
  0x34   :  { %s784_s16 = smov [#allocation8]   ;;  %s727_s21 = scalar_lea.hbm %s929_s5, 1024 }
  0x35   :  { %s59_s17 = sshll.u32 %s784_s16, 4  ;;  %p728_p10 = scmp.ne.s32.totalorder %s929_s5, %s727_s21  ;;  %s60_s17 = int_to_ptr.vmem [resolvable:$true] %s59_s17 }
  0x36   :  { %p731_p11 = scmp.lt.u32.totalorder %s727_s21, %s929_s5 }
  0x38   :  { %p733_p12 = pnand %p731_p11, %p728_p10 }
  0x3a   :  { %736 = shalt.err (!%p733_p12)
}
  0x3b   :  { %s737_s1 = scalar_lea.vmem %s60_s17, 1024  ;;  %p742_p0 = scmp.lt.s32.totalorder %s60_s17, %s60_s17 }
  0x3c   :  { %p738_p13 = scmp.ne.s32.totalorder %s60_s17, %s737_s1  ;;  %p743_p1 = scmp.lt.s32.totalorder %s737_s1, %s737_s1 }
  0x3e   :  { %p744_p2 = por %p743_p1, %p742_p0 }
  0x40   :  { %p745_p3 = pnand %p744_p2, %p738_p13 }
  0x42   :  { %748 = shalt.err (!%p745_p3)
}
  0x43   :  { %65 = dma.hbm_to_vmem [thread:$0]  %s929_s5, 1024, %s60_s17, [#allocation9], %s780_s11, %s780_s11, %s781_s12  }
  0x44   :  { %771 = dma.done.wait [#allocation3], 256  }
  0x45   :  { %772 = vsyncadd [#allocation3], 4294967040 }
  0x46   :  { %773 = dma.done.wait [#allocation6], 3072  }
  0x47   :  { %774 = vsyncadd [#allocation6], 4294964224 }
  0x48   :  { %775 = dma.done.wait [#allocation9], 1024  }
  0x49   :  { %776 = vsyncadd [#allocation9], 4294966272  ;;  %v785_v0 = vmov 0.0   ;;  %v629_v1 = vld [vmem:[#allocation5 + $0x40] sm:$0xff]   ;;  %v631_v3 = vld [vmem:[#allocation5 + $0x48] sm:$0xff]   ;;  %vm786_vm0 = vmmov 0  }
  0x4a   :  { %580 = vmatprep.subr.bf16.mxu1 %v785_v0  ;;  %v630_v2 = vld [vmem:[#allocation5] sm:$0xff]   ;;  %540 = vmatprep.subr.bf16.mxu0 %v629_v1  ;;  %v632_v4 = vld [vmem:[#allocation5 + $0x8] sm:$0xff]   ;;  %v633_v5 = vld [vmem:[#allocation5 + $0x50] sm:$0xff]   ;;  %s787_s28 = smov [#allocation10]  }
  0x4b   :  { %541 = vmatpush3.bf16.msra.mxu0 %v630_v2  ;;  %v634_v6 = vld [vmem:[#allocation5 + $0x10] sm:$0xff]   ;;  %v635_v7 = vld [vmem:[#allocation5 + $0x58] sm:$0xff]   ;;  %v637_v9 = vld [vmem:[#allocation5 + $0x60] sm:$0xff]   ;;  %596 = vmatprep.mubr.msk.bf16.mxu1 %vm786_vm0, %v785_v0  ;;  %s494_s29 = sshll.u32 %s787_s28, 4  ;;  %s495_s29 = int_to_ptr.vmem [resolvable:$true] %s494_s29 }
  0x4c   :  { %542 = vmatprep.subr.bf16.mxu0 %v631_v3  ;;  %v636_v8 = vld [vmem:[#allocation5 + $0x18] sm:$0xff]   ;;  %v638_v10 = vld [vmem:[#allocation5 + $0x20] sm:$0xff]   ;;  %v639_v11 = vld [vmem:[#allocation5 + $0x68] sm:$0xff]   ;;  %p754_p5 = scmp.lt.s32.totalorder %s495_s29, %s495_s29 }
  0x4d   :  { %v82_v12 = vld [vmem:[#allocation2 + $0x8] sm:$0xff]  ;;  %v645_v14 = vld [vmem:[#allocation7] sm:$0xff]   ;;  %v640_v15 = vld [vmem:[#allocation5 + $0x28] sm:$0xff]  }
  0x4e   :  { %v84_v13 = vpack.c.bf16 %v82_v12, %v82_v12  ;;  %v641_v16 = vld [vmem:[#allocation5 + $0x70] sm:$0xff]   ;;  %581 = vmatpush3.bf16.msra.mxu1 %v645_v14  ;;  %v646_v17 = vld [vmem:[#allocation7 + $0x8] sm:$0xff]   ;;  %v643_v19 = vld [vmem:[#allocation5 + $0x78] sm:$0xff]  }
  0x4f   :  { %543 = vmatpush3.bf16.msra.mxu0 %v632_v4  ;;  %v642_v18 = vld [vmem:[#allocation5 + $0x30] sm:$0xff]   ;;  %582 = vmatprep.subr.bf16.mxu1 %v785_v0  ;;  %v644_v21 = vld [vmem:[#allocation5 + $0x38] sm:$0xff]   ;;  %v649_v25 = vld [vmem:[#allocation7 + $0x20] sm:$0xff]  }
  0x50   :  { %544 = vmatprep.subr.bf16.mxu0 %v633_v5  ;;  %252 = vmatprep.mubr.bf16.mxu0 %v84_v13  ;;  %v647_v20 = vld [vmem:[#allocation7 + $0x10] sm:$0xff]   ;;  %v648_v23 = vld [vmem:[#allocation7 + $0x18] sm:$0xff]   ;;  %v650_v26 = vld [vmem:[#allocation7 + $0x28] sm:$0xff]  }
  0x51   :  { %v81_v22 = vld [vmem:[#allocation2] sm:$0xff]  ;;  %v652_v28 = vld [vmem:[#allocation7 + $0x38] sm:$0xff]   ;;  %v653_v29 = vld [vmem:[#allocation8] sm:$0xff]  }
  0x52   :  { %583 = vmatpush3.bf16.msra.mxu1 %v646_v17  ;;  %v83_v24 = vpack.c.bf16 %v81_v22, %v81_v22  ;;  %v651_v27 = vld [vmem:[#allocation7 + $0x30] sm:$0xff]   ;;  %v654_v30 = vld [vmem:[#allocation8 + $0x8] sm:$0xff]   ;;  %v656_v32 = vld [vmem:[#allocation8 + $0x18] sm:$0xff]  }
  0x53   :  { %545 = vmatpush3.bf16.msra.mxu0 %v634_v6  ;;  %584 = vmatprep.subr.bf16.mxu1 %v785_v0  ;;  %v655_v31 = vld [vmem:[#allocation8 + $0x10] sm:$0xff]   ;;  %v657_v33 = vld [vmem:[#allocation8 + $0x20] sm:$0xff]   ;;  %v658_v34 = vld [vmem:[#allocation8 + $0x28] sm:$0xff]  }
  0x54   :  { %546 = vmatprep.subr.bf16.mxu0 %v635_v7  ;;  %v505_v36 = vld [vmem:[%s926_s2] ss:$0 sm:$0xff]  ;;  %v660_v45 = vld [vmem:[#allocation8 + $0x38] sm:$0xff]  }
  0x55   :  { %v659_v44 = vld [vmem:[#allocation8 + $0x30] sm:$0xff]  }
  0x56   :  { %585 = vmatpush3.bf16.msra.mxu1 %v647_v20  ;;  %v522_v46 = vld [vmem:[%s928_s4] ss:$0 sm:$0xff]  ;;  %s749_s4 = scalar_lea.vmem %s495_s29, 128 }
  0x57   :  { %547 = vmatpush3.bf16.msra.mxu0 %v636_v8  ;;  %586 = vmatprep.subr.bf16.mxu1 %v785_v0  ;;  %v531_v54 = vld [vmem:[%s930_s6] ss:$0 sm:$0xff]  ;;  %p750_p4 = scmp.ne.s32.totalorder %s495_s29, %s749_s4  ;;  %p755_p6 = scmp.lt.s32.totalorder %s749_s4, %s749_s4 }
  0x58   :  { %548 = vmatprep.subr.bf16.mxu0 %v637_v9 }
  0x59   :  { %p756_p7 = por %p755_p6, %p754_p5 }
  0x5a   :  { %587 = vmatpush3.bf16.msra.mxu1 %v648_v23 }
  0x5b   :  { %549 = vmatpush3.bf16.msra.mxu0 %v638_v10  ;;  %588 = vmatprep.subr.bf16.mxu1 %v785_v0  ;;  %p757_p8 = pnand %p756_p7, %p750_p4 }
  0x5c   :  { %550 = vmatprep.subr.bf16.mxu0 %v639_v11 }
  0x5e   :  { %589 = vmatpush3.bf16.msra.mxu1 %v649_v25 }
  0x5f   :  { %551 = vmatpush3.bf16.msra.mxu0 %v640_v15  ;;  %590 = vmatprep.subr.bf16.mxu1 %v785_v0 }
  0x60   :  { %552 = vmatprep.subr.bf16.mxu0 %v641_v16 }
  0x62   :  { %591 = vmatpush3.bf16.msra.mxu1 %v650_v26 }
  0x63   :  { %553 = vmatpush3.bf16.msra.mxu0 %v642_v18  ;;  %592 = vmatprep.subr.bf16.mxu1 %v785_v0 }
  0x64   :  { %554 = vmatprep.subr.bf16.mxu0 %v643_v19 }
  0x66   :  { %593 = vmatpush3.bf16.msra.mxu1 %v651_v27 }
  0x67   :  { %555 = vmatpush3.bf16.msra.mxu0 %v644_v21  ;;  %594 = vmatprep.subr.bf16.mxu1 %v785_v0 }
  0x68   :  { %600 = vmatprep.subr.bf16.mxu0 %v785_v0 }
  0x6a   :  { %253 = vmatmul.mubr.bf16.vlgmr.msra.gmra.mrb[0].mxu0 %v83_v24  ;;  %595 = vmatpush3.bf16.msra.mxu1 %v652_v28 }
  0x6b   :  { %616 = vmatprep.mubr.msk.bf16.mxu0 %vm786_vm0, %v785_v0  ;;  %601 = vmatpush3.bf16.msra.mxu0 %v653_v29 }
  0x6c   :  { %602 = vmatprep.subr.bf16.mxu0 %v785_v0 }
  0x6f   :  { %603 = vmatpush3.bf16.msra.mxu0 %v654_v30 }
  0x70   :  { %604 = vmatprep.subr.bf16.mxu0 %v785_v0 }
  0x73   :  { %605 = vmatpush3.bf16.msra.mxu0 %v655_v31 }
  0x74   :  { %606 = vmatprep.subr.bf16.mxu0 %v785_v0 }
  0x77   :  { %607 = vmatpush3.bf16.msra.mxu0 %v656_v32 }
  0x78   :  { %608 = vmatprep.subr.bf16.mxu0 %v785_v0 }
  0x7b   :  { %609 = vmatpush3.bf16.msra.mxu0 %v657_v33 }
  0x7c   :  { %610 = vmatprep.subr.bf16.mxu0 %v785_v0 }
  0x7f   :  { %611 = vmatpush3.bf16.msra.mxu0 %v658_v34 }
  0x80   :  { %612 = vmatprep.subr.bf16.mxu0 %v785_v0 }
  0x83   :  { %613 = vmatpush3.bf16.msra.mxu0 %v659_v44 }
  0x84   :  { %614 = vmatprep.subr.bf16.mxu0 %v785_v0 }
  0x87   :  { %615 = vmatpush3.bf16.msra.mxu0 %v660_v45 }
 0x13d   :  { %v556_v35 = vpop.f32.mrb[0].mxu0 }
 0x13e   :  { %v557_v37 = vpop.f32.mrb[1].mxu0 }
 0x13f   :  { %v558_v38 = vadd.f32 %v557_v37, %v556_v35  ;;  %v559_v39 = vpop.f32.mrb[2].mxu0 }
 0x140   :  { %v560_v40 = vpop.f32.mrb[3].mxu0 }
 0x141   :  { %v255_v41 = vadd.f32 %v558_v38, %v505_v36 }
 0x143   :  { %v260_v42 = vmax.f32 %v255_v41, 0.0 }
 0x145   :  { %v261_v43 = vpack.c.bf16 %v260_v42, %v260_v42 }
 0x147   :  { %597 = vmatmul.mubr.bf16.vlgmr.msra.gmra.mrb[0].mxu1 %v261_v43 }
 0x21a   :  { %v367_v47 = vpop.f32.mrb[0].mxu1 }
 0x21b   :  { %v368_v48 = vadd.f32 %v522_v46, %v367_v47  ;;  %v598_v49 = vpop.f32.mrb[1].mxu1 }
 0x21c   :  { %v370_v50 = vpop.f32.mrb[2].mxu1 }
 0x21d   :  { %v373_v51 = vmax.f32 %v368_v48, 0.0  ;;  %v599_v52 = vpop.f32.mrb[3].mxu1 }
 0x21f   :  { %v374_v53 = vpack.c.bf16 %v373_v51, %v373_v51 }
 0x221   :  { %617 = vmatmul.mubr.bf16.vlgmr.msra.gmra.mrb[4].mxu0 %v374_v53 }
 0x2f4   :  { %v480_v55 = vpop.f32.mrb[4].mxu0 }
 0x2f5   :  { %v481_v56 = vadd.f32 %v531_v54, %v480_v55  ;;  %v618_v57 = vpop.f32.mrb[5].mxu0 }
 0x2f6   :  { %v483_v58 = vpop.f32.mrb[6].mxu0 }
 0x2f7   :  { %v486_v59 = vmax.f32 %v481_v56, 0.0  ;;  %v619_v60 = vpop.f32.mrb[7].mxu0 }
 0x2f9   :  { %487 = vst [vmem:[#allocation10] sm:$0xff] %v486_v59 }
 0x2fa   :  { %760 = shalt.err (!%p757_p8)
}
 0x2fb   :  { %s761_s6 = scalar_lea.hbm %s931_s7, 128 }
 0x2fc   :  { %p762_p9 = scmp.ne.s32.totalorder %s931_s7, %s761_s6  ;;  %p765_p10 = scmp.lt.u32.totalorder %s761_s6, %s931_s7 }
 0x2fe   :  { %p767_p11 = pnand %p765_p10, %p762_p9 }
 0x300   :  { %770 = shalt.err (!%p767_p11)
}
 0x301   :  { %497 = dma.vmem_to_hbm [thread:$0]  %s495_s29, 128, %s931_s7, [#allocation4]  }
 0x302   :  { %777 = dma.done.wait [#allocation4], 128  }
 0x303   :  { %778 = vsyncadd [#allocation4], 4294967168 }
 0x304   :  { %501 = vsyncpa [#allocation3], 1 }
 0x305   :  { %502 = vsyncpa [#allocation6], 1 }
 0x306   :  { %503 = vsyncpa [#allocation9], 1 }
 0x307   :  { %504 = vsyncpa [#allocation4], 1 }

// kernel: tpu_custom_call.1
= control target key start
LH: loop header
LB: loop body
LE: loop exit
PB: predicated region body
PF: predicated region fallthrough
CT: control target
= control target key end

     0   :  { %12 = vsyncpa [#allocation3], 0  ;;  %s924_s0 = inlined_call_operand.hbm [shape: f32[8,256], index: 0, kind: input, shape index: {}]   ;;  %s925_s1 = inlined_call_operand.hbm [shape: bf16[256,128], index: 1, kind: input, shape index: {}]   ;;  %s926_s2 = inlined_call_operand.vmem [shape: f32[1,128], index: 2, kind: input, shape index: {}]   ;;  %s927_s3 = inlined_call_operand.hbm [shape: bf16[128,128], index: 3, kind: input, shape index: {}]   ;;  %s928_s4 = inlined_call_operand.vmem [shape: f32[1,128], index: 4, kind: input, shape index: {}]   ;;  %s929_s5 = inlined_call_operand.hbm [shape: bf16[128,128], index: 5, kind: input, shape index: {}]   ;;  %s930_s6 = inlined_call_operand.vmem [shape: f32[1,128], index: 6, kind: input, shape index: {}]   ;;  %s931_s7 = inlined_call_operand.hbm [shape: f32[8,128], index: 7, kind: output, shape index: {}]  }
   0x1   :  { %13 = vsyncpa [#allocation6], 0 }
   0x2   :  { %14 = vsyncpa [#allocation9], 0 }
   0x3   :  { %15 = vsyncpa [#allocation4], 0  ;;  %s779_s24 = smov [#allocation5]   ;;  %s661_s28 = scalar_lea.hbm %s925_s1, 2048 }
   0x4   :  { %s31_s25 = sshll.u32 %s779_s24, 4  ;;  %p662_p0 = scmp.ne.s32.totalorder %s925_s1, %s661_s28  ;;  %s32_s25 = int_to_ptr.vmem [resolvable:$true] %s31_s25 }
   0x5   :  { %p665_p1 = scmp.lt.u32.totalorder %s661_s28, %s925_s1 }
   0x7   :  { %p667_p2 = pnand %p665_p1, %p662_p0 }
   0x9   :  { %670 = shalt.err (!%p667_p2)
}
   0xa   :  { %s671_s10 = scalar_lea.vmem %s32_s25, 2048  ;;  %p676_p4 = scmp.lt.s32.totalorder %s32_s25, %s32_s25 }
   0xb   :  { %p672_p3 = scmp.ne.s32.totalorder %s32_s25, %s671_s10  ;;  %p677_p5 = scmp.lt.s32.totalorder %s671_s10, %s671_s10 }
   0xd   :  { %p678_p6 = por %p677_p5, %p676_p4 }
   0xf   :  { %p679_p7 = pnand %p678_p6, %p672_p3 }
  0x11   :  { %682 = shalt.err (!%p679_p7)
}
  0x12   :  { %s780_s11 = smov 64   ;;  %s781_s12 = smov 4  }
  0x13   :  { %37 = dma.hbm_to_vmem [thread:$0]  %s925_s1, 2048, %s32_s25, [#allocation6], %s780_s11, %s780_s11, %s781_s12  }
  0x14   :  { %s782_s15 = smov [#allocation2]   ;;  %s783_s17 = smov [#allocation7]  }
  0x15   :  { %s22_s16 = sshll.u32 %s782_s15, 4  ;;  %s45_s18 = sshll.u32 %s783_s17, 4  ;;  %s23_s16 = int_to_ptr.vmem [resolvable:$true] %s22_s16  ;;  %s46_s18 = int_to_ptr.vmem [resolvable:$true] %s45_s18 }
  0x16   :  { %s683_s21 = scalar_lea.hbm %s924_s0, 256 }
  0x17   :  { %p684_p8 = scmp.ne.s32.totalorder %s924_s0, %s683_s21  ;;  %p687_p9 = scmp.lt.u32.totalorder %s683_s21, %s924_s0 }
  0x19   :  { %p689_p10 = pnand %p687_p9, %p684_p8 }
  0x1b   :  { %692 = shalt.err (!%p689_p10)
}
  0x1c   :  { %s693_s1 = scalar_lea.vmem %s23_s16, 256  ;;  %p698_p12 = scmp.lt.s32.totalorder %s23_s16, %s23_s16 }
  0x1d   :  { %p694_p11 = scmp.ne.s32.totalorder %s23_s16, %s693_s1  ;;  %p699_p13 = scmp.lt.s32.totalorder %s693_s1, %s693_s1 }
  0x1f   :  { %p700_p0 = por %p699_p13, %p698_p12 }
  0x21   :  { %p701_p1 = pnand %p700_p0, %p694_p11 }
  0x23   :  { %704 = shalt.err (!%p701_p1)
}
  0x24   :  { %25 = dma.hbm_to_vmem [thread:$0]  %s924_s0, 256, %s23_s16, [#allocation3]  }
  0x25   :  { %s705_s30 = scalar_lea.hbm %s927_s3, 1024 }
  0x26   :  { %p706_p2 = scmp.ne.s32.totalorder %s927_s3, %s705_s30  ;;  %p709_p3 = scmp.lt.u32.totalorder %s705_s30, %s927_s3 }
  0x28   :  { %p711_p4 = pnand %p709_p3, %p706_p2 }
  0x2a   :  { %714 = shalt.err (!%p711_p4)
}
  0x2b   :  { %s715_s14 = scalar_lea.vmem %s46_s18, 1024  ;;  %p720_p6 = scmp.lt.s32.totalorder %s46_s18, %s46_s18 }
  0x2c   :  { %p716_p5 = scmp.ne.s32.totalorder %s46_s18, %s715_s14  ;;  %p721_p7 = scmp.lt.s32.totalorder %s715_s14, %s715_s14 }
  0x2e   :  { %p722_p8 = por %p721_p7, %p720_p6 }
  0x30   :  { %p723_p9 = pnand %p722_p8, %p716_p5 }
  0x32   :  { %726 = shalt.err (!%p723_p9)
}
  0x33   :  { %51 = dma.hbm_to_vmem [thread:$0]  %s927_s3, 1024, %s46_s18, [#allocation6], %s780_s11, %s780_s11, %s781_s12  }
  0x34   :  { %s784_s16 = smov [#allocation8]   ;;  %s727_s21 = scalar_lea.hbm %s929_s5, 1024 }
  0x35   :  { %s59_s17 = sshll.u32 %s784_s16, 4  ;;  %p728_p10 = scmp.ne.s32.totalorder %s929_s5, %s727_s21  ;;  %s60_s17 = int_to_ptr.vmem [resolvable:$true] %s59_s17 }
  0x36   :  { %p731_p11 = scmp.lt.u32.totalorder %s727_s21, %s929_s5 }
  0x38   :  { %p733_p12 = pnand %p731_p11, %p728_p10 }
  0x3a   :  { %736 = shalt.err (!%p733_p12)
}
  0x3b   :  { %s737_s1 = scalar_lea.vmem %s60_s17, 1024  ;;  %p742_p0 = scmp.lt.s32.totalorder %s60_s17, %s60_s17 }
  0x3c   :  { %p738_p13 = scmp.ne.s32.totalorder %s60_s17, %s737_s1  ;;  %p743_p1 = scmp.lt.s32.totalorder %s737_s1, %s737_s1 }
  0x3e   :  { %p744_p2 = por %p743_p1, %p742_p0 }
  0x40   :  { %p745_p3 = pnand %p744_p2, %p738_p13 }
  0x42   :  { %748 = shalt.err (!%p745_p3)
}
  0x43   :  { %65 = dma.hbm_to_vmem [thread:$0]  %s929_s5, 1024, %s60_s17, [#allocation9], %s780_s11, %s780_s11, %s781_s12  }
  0x44   :  { %771 = dma.done.wait [#allocation3], 256  }
  0x45   :  { %772 = vsyncadd [#allocation3], 4294967040 }
  0x46   :  { %773 = dma.done.wait [#allocation6], 3072  }
  0x47   :  { %774 = vsyncadd [#allocation6], 4294964224 }
  0x48   :  { %775 = dma.done.wait [#allocation9], 1024  }
  0x49   :  { %776 = vsyncadd [#allocation9], 4294966272  ;;  %v785_v0 = vmov 0.0   ;;  %v629_v1 = vld [vmem:[#allocation5 + $0x40] sm:$0xff]   ;;  %v631_v3 = vld [vmem:[#allocation5 + $0x48] sm:$0xff]   ;;  %vm786_vm0 = vmmov 0  }
  0x4a   :  { %580 = vmatprep.subr.bf16.mxu1 %v785_v0  ;;  %v630_v2 = vld [vmem:[#allocation5] sm:$0xff]   ;;  %540 = vmatprep.subr.bf16.mxu0 %v629_v1  ;;  %v632_v4 = vld [vmem:[#allocation5 + $0x8] sm:$0xff]   ;;  %v633_v5 = vld [vmem:[#allocation5 + $0x50] sm:$0xff]   ;;  %s787_s28 = smov [#allocation10]  }
  0x4b   :  { %541 = vmatpush3.bf16.msra.mxu0 %v630_v2  ;;  %v634_v6 = vld [vmem:[#allocation5 + $0x10] sm:$0xff]   ;;  %v635_v7 = vld [vmem:[#allocation5 + $0x58] sm:$0xff]   ;;  %v637_v9 = vld [vmem:[#allocation5 + $0x60] sm:$0xff]   ;;  %596 = vmatprep.mubr.msk.bf16.mxu1 %vm786_vm0, %v785_v0  ;;  %s494_s29 = sshll.u32 %s787_s28, 4  ;;  %s495_s29 = int_to_ptr.vmem [resolvable:$true] %s494_s29 }
  0x4c   :  { %542 = vmatprep.subr.bf16.mxu0 %v631_v3  ;;  %v636_v8 = vld [vmem:[#allocation5 + $0x18] sm:$0xff]   ;;  %v638_v10 = vld [vmem:[#allocation5 + $0x20] sm:$0xff]   ;;  %v639_v11 = vld [vmem:[#allocation5 + $0x68] sm:$0xff]   ;;  %p754_p5 = scmp.lt.s32.totalorder %s495_s29, %s495_s29 }
  0x4d   :  { %v82_v12 = vld [vmem:[#allocation2 + $0x8] sm:$0xff]  ;;  %v645_v14 = vld [vmem:[#allocation7] sm:$0xff]   ;;  %v640_v15 = vld [vmem:[#allocation5 + $0x28] sm:$0xff]  }
  0x4e   :  { %v84_v13 = vpack.c.bf16 %v82_v12, %v82_v12  ;;  %v641_v16 = vld [vmem:[#allocation5 + $0x70] sm:$0xff]   ;;  %581 = vmatpush3.bf16.msra.mxu1 %v645_v14  ;;  %v646_v17 = vld [vmem:[#allocation7 + $0x8] sm:$0xff]   ;;  %v643_v19 = vld [vmem:[#allocation5 + $0x78] sm:$0xff]  }
  0x4f   :  { %543 = vmatpush3.bf16.msra.mxu0 %v632_v4  ;;  %v642_v18 = vld [vmem:[#allocation5 + $0x30] sm:$0xff]   ;;  %582 = vmatprep.subr.bf16.mxu1 %v785_v0  ;;  %v644_v21 = vld [vmem:[#allocation5 + $0x38] sm:$0xff]   ;;  %v649_v25 = vld [vmem:[#allocation7 + $0x20] sm:$0xff]  }
  0x50   :  { %544 = vmatprep.subr.bf16.mxu0 %v633_v5  ;;  %252 = vmatprep.mubr.bf16.mxu0 %v84_v13  ;;  %v647_v20 = vld [vmem:[#allocation7 + $0x10] sm:$0xff]   ;;  %v648_v23 = vld [vmem:[#allocation7 + $0x18] sm:$0xff]   ;;  %v650_v26 = vld [vmem:[#allocation7 + $0x28] sm:$0xff]  }
  0x51   :  { %v81_v22 = vld [vmem:[#allocation2] sm:$0xff]  ;;  %v652_v28 = vld [vmem:[#allocation7 + $0x38] sm:$0xff]   ;;  %v653_v29 = vld [vmem:[#allocation8] sm:$0xff]  }
  0x52   :  { %583 = vmatpush3.bf16.msra.mxu1 %v646_v17  ;;  %v83_v24 = vpack.c.bf16 %v81_v22, %v81_v22  ;;  %v651_v27 = vld [vmem:[#allocation7 + $0x30] sm:$0xff]   ;;  %v654_v30 = vld [vmem:[#allocation8 + $0x8] sm:$0xff]   ;;  %v656_v32 = vld [vmem:[#allocation8 + $0x18] sm:$0xff]  }
  0x53   :  { %545 = vmatpush3.bf16.msra.mxu0 %v634_v6  ;;  %584 = vmatprep.subr.bf16.mxu1 %v785_v0  ;;  %v655_v31 = vld [vmem:[#allocation8 + $0x10] sm:$0xff]   ;;  %v657_v33 = vld [vmem:[#allocation8 + $0x20] sm:$0xff]   ;;  %v658_v34 = vld [vmem:[#allocation8 + $0x28] sm:$0xff]  }
  0x54   :  { %546 = vmatprep.subr.bf16.mxu0 %v635_v7  ;;  %v505_v36 = vld [vmem:[%s926_s2] ss:$0 sm:$0xff]  ;;  %v660_v45 = vld [vmem:[#allocation8 + $0x38] sm:$0xff]  }
  0x55   :  { %v659_v44 = vld [vmem:[#allocation8 + $0x30] sm:$0xff]  }
  0x56   :  { %585 = vmatpush3.bf16.msra.mxu1 %v647_v20  ;;  %v522_v46 = vld [vmem:[%s928_s4] ss:$0 sm:$0xff]  ;;  %s749_s4 = scalar_lea.vmem %s495_s29, 128 }
  0x57   :  { %547 = vmatpush3.bf16.msra.mxu0 %v636_v8  ;;  %586 = vmatprep.subr.bf16.mxu1 %v785_v0  ;;  %v531_v54 = vld [vmem:[%s930_s6] ss:$0 sm:$0xff]  ;;  %p750_p4 = scmp.ne.s32.totalorder %s495_s29, %s749_s4  ;;  %p755_p6 = scmp.lt.s32.totalorder %s749_s4, %s749_s4 }
  0x58   :  { %548 = vmatprep.subr.bf16.mxu0 %v637_v9 }
  0x59   :  { %p756_p7 = por %p755_p6, %p754_p5 }
  0x5a   :  { %587 = vmatpush3.bf16.msra.mxu1 %v648_v23 }
  0x5b   :  { %549 = vmatpush3.bf16.msra.mxu0 %v638_v10  ;;  %588 = vmatprep.subr.bf16.mxu1 %v785_v0  ;;  %p757_p8 = pnand %p756_p7, %p750_p4 }
  0x5c   :  { %550 = vmatprep.subr.bf16.mxu0 %v639_v11 }
  0x5e   :  { %589 = vmatpush3.bf16.msra.mxu1 %v649_v25 }
  0x5f   :  { %551 = vmatpush3.bf16.msra.mxu0 %v640_v15  ;;  %590 = vmatprep.subr.bf16.mxu1 %v785_v0 }
  0x60   :  { %552 = vmatprep.subr.bf16.mxu0 %v641_v16 }
  0x62   :  { %591 = vmatpush3.bf16.msra.mxu1 %v650_v26 }
  0x63   :  { %553 = vmatpush3.bf16.msra.mxu0 %v642_v18  ;;  %592 = vmatprep.subr.bf16.mxu1 %v785_v0 }
  0x64   :  { %554 = vmatprep.subr.bf16.mxu0 %v643_v19 }
  0x66   :  { %593 = vmatpush3.bf16.msra.mxu1 %v651_v27 }
  0x67   :  { %555 = vmatpush3.bf16.msra.mxu0 %v644_v21  ;;  %594 = vmatprep.subr.bf16.mxu1 %v785_v0 }
  0x68   :  { %600 = vmatprep.subr.bf16.mxu0 %v785_v0 }
  0x6a   :  { %253 = vmatmul.mubr.bf16.vlgmr.msra.gmra.mrb[0].mxu0 %v83_v24  ;;  %595 = vmatpush3.bf16.msra.mxu1 %v652_v28 }
  0x6b   :  { %616 = vmatprep.mubr.msk.bf16.mxu0 %vm786_vm0, %v785_v0  ;;  %601 = vmatpush3.bf16.msra.mxu0 %v653_v29 }
  0x6c   :  { %602 = vmatprep.subr.bf16.mxu0 %v785_v0 }
  0x6f   :  { %603 = vmatpush3.bf16.msra.mxu0 %v654_v30 }
  0x70   :  { %604 = vmatprep.subr.bf16.mxu0 %v785_v0 }
  0x73   :  { %605 = vmatpush3.bf16.msra.mxu0 %v655_v31 }
  0x74   :  { %606 = vmatprep.subr.bf16.mxu0 %v785_v0 }
  0x77   :  { %607 = vmatpush3.bf16.msra.mxu0 %v656_v32 }
  0x78   :  { %608 = vmatprep.subr.bf16.mxu0 %v785_v0 }
  0x7b   :  { %609 = vmatpush3.bf16.msra.mxu0 %v657_v33 }
  0x7c   :  { %610 = vmatprep.subr.bf16.mxu0 %v785_v0 }
  0x7f   :  { %611 = vmatpush3.bf16.msra.mxu0 %v658_v34 }
  0x80   :  { %612 = vmatprep.subr.bf16.mxu0 %v785_v0 }
  0x83   :  { %613 = vmatpush3.bf16.msra.mxu0 %v659_v44 }
  0x84   :  { %614 = vmatprep.subr.bf16.mxu0 %v785_v0 }
  0x87   :  { %615 = vmatpush3.bf16.msra.mxu0 %v660_v45 }
 0x13d   :  { %v556_v35 = vpop.f32.mrb[0].mxu0 }
 0x13e   :  { %v557_v37 = vpop.f32.mrb[1].mxu0 }
 0x13f   :  { %v558_v38 = vadd.f32 %v557_v37, %v556_v35  ;;  %v559_v39 = vpop.f32.mrb[2].mxu0 }
 0x140   :  { %v560_v40 = vpop.f32.mrb[3].mxu0 }
 0x141   :  { %v255_v41 = vadd.f32 %v558_v38, %v505_v36 }
 0x143   :  { %v260_v42 = vmax.f32 %v255_v41, 0.0 }
 0x145   :  { %v261_v43 = vpack.c.bf16 %v260_v42, %v260_v42 }
 0x147   :  { %597 = vmatmul.mubr.bf16.vlgmr.msra.gmra.mrb[0].mxu1 %v261_v43 }
 0x21a   :  { %v367_v47 = vpop.f32.mrb[0].mxu1 }
 0x21b   :  { %v368_v48 = vadd.f32 %v522_v46, %v367_v47  ;;  %v598_v49 = vpop.f32.mrb[1].mxu1 }
 0x21c   :  { %v370_v50 = vpop.f32.mrb[2].mxu1 }
 0x21d   :  { %v373_v51 = vmax.f32 %v368_v48, 0.0  ;;  %v599_v52 = vpop.f32.mrb[3].mxu1 }
 0x21f   :  { %v374_v53 = vpack.c.bf16 %v373_v51, %v373_v51 }
 0x221   :  { %617 = vmatmul.mubr.bf16.vlgmr.msra.gmra.mrb[4].mxu0 %v374_v53 }
 0x2f4   :  { %v480_v55 = vpop.f32.mrb[4].mxu0 }
 0x2f5   :  { %v481_v56 = vadd.f32 %v531_v54, %v480_v55  ;;  %v618_v57 = vpop.f32.mrb[5].mxu0 }
 0x2f6   :  { %v483_v58 = vpop.f32.mrb[6].mxu0 }
 0x2f7   :  { %v486_v59 = vmax.f32 %v481_v56, 0.0  ;;  %v619_v60 = vpop.f32.mrb[7].mxu0 }
 0x2f9   :  { %487 = vst [vmem:[#allocation10] sm:$0xff] %v486_v59 }
 0x2fa   :  { %760 = shalt.err (!%p757_p8)
}
 0x2fb   :  { %s761_s6 = scalar_lea.hbm %s931_s7, 128 }
 0x2fc   :  { %p762_p9 = scmp.ne.s32.totalorder %s931_s7, %s761_s6  ;;  %p765_p10 = scmp.lt.u32.totalorder %s761_s6, %s931_s7 }
 0x2fe   :  { %p767_p11 = pnand %p765_p10, %p762_p9 }
 0x300   :  { %770 = shalt.err (!%p767_p11)
}
 0x301   :  { %497 = dma.vmem_to_hbm [thread:$0]  %s495_s29, 128, %s931_s7, [#allocation4]  }
 0x302   :  { %777 = dma.done.wait [#allocation4], 128  }
 0x303   :  { %778 = vsyncadd [#allocation4], 4294967168 }
 0x304   :  { %501 = vsyncpa [#allocation3], 1 }
 0x305   :  { %502 = vsyncpa [#allocation6], 1 }
 0x306   :  { %503 = vsyncpa [#allocation9], 1 }
 0x307   :  { %504 = vsyncpa [#allocation4], 1 }

</bundles_post_ra>
